<compile_context>
chip_gen: v6e
topology: v6e:2x2x1
jax: 0.10.0
libtpu: 0.0.40
codegen_flags: <defaults>
</compile_context>

<pallas_src>
import math

import jax
import jax.numpy as jnp
from jax.experimental import pallas as pl
from jax.experimental.pallas import tpu as pltpu

_LANE = 128
_SUBLANE_F32 = 8
_BYPASS_BYTES = 256 * 1024      # below this, XLA's fused slice+max wins


def _maxpool_kernel(x_ref, y_ref, o_ref):
    # Elementwise max of the two halves — the whole hot path.
    o_ref[...] = jnp.maximum(x_ref[...], y_ref[...])


def _cdiv(a, b):
    return -(-a // b)


def _largest_aligned_divisor(n, align, cap):
    """Largest d with d % align == 0, n % d == 0 and d <= cap (assumes n % align == 0)."""
    cap = max(align, min(cap, n))
    cap -= cap % align
    for d in range(cap, align - 1, -align):
        if n % d == 0:
            return d
    return align


def _vmem_budgets():
    """(scoped vmem limit, per-stream block byte budget), generation-aware."""
    try:
        cap = pltpu.get_tpu_info().vmem_capacity_bytes
    except Exception:
        cap = 64 * 1024 * 1024                       # conservative (v7x-sized)
    if cap >= 128 * 1024 * 1024:                     # v5e / v6e: 128 MiB physical
        return 64 * 1024 * 1024, 8 * 1024 * 1024
    return 32 * 1024 * 1024, 4 * 1024 * 1024         # v7x: 64 MiB physical


def _slice_max(z, axis, half):
    x = jax.lax.slice_in_dim(z, 0, half, axis=axis)
    y = jax.lax.slice_in_dim(z, half, 2 * half, axis=axis)
    return jnp.maximum(x, y)


def max_pool(z, axis=1):
    """Split z into two equal halves along `axis`, return their elementwise maximum."""
    axis = axis % z.ndim
    a = z.shape[axis]
    if a % 2 != 0:
        # PyTorch's z.split(a // 2) on an odd axis yields 3 chunks and the
        # two-way unpack fails there too; require an even split axis.
        raise ValueError(f"max_pool: size of axis {axis} must be even, got {a}")
    half = a // 2

    prefix = math.prod(z.shape[:axis])
    suffix = math.prod(z.shape[axis + 1:])
    m = half * suffix                       # elements per half, per leading index
    itemsize = jnp.dtype(z.dtype).itemsize
    out_nd_shape = z.shape[:axis] + (half,) + z.shape[axis + 1:]

    total_bytes = prefix * 2 * m * itemsize
    if total_bytes < _BYPASS_BYTES:
        # Dispatch + per-grid-step overhead dominates at tiny sizes; a 1-step
        # grid would also idle one v7x TensorCore. Let XLA fuse slice+max.
        return _slice_max(z, axis, half)

    vmem_limit, block_budget = _vmem_budgets()
    cost = pl.CostEstimate(flops=prefix * m, transcendentals=0,
                           bytes_accessed=3 * prefix * m * itemsize)
    cparams = pltpu.CompilerParams(
        dimension_semantics=("parallel", "parallel"),
        vmem_limit_bytes=vmem_limit)

    if m % _LANE == 0:
        # ---- Fast path: lane-dense 2-D tiles; the half-split lives entirely in
        # the index_maps (same HBM buffer passed twice, column-block offset).
        z2 = z.reshape(prefix, 2 * m)
        sublane = max(_SUBLANE_F32, (_SUBLANE_F32 * 4) // itemsize)  # 8 f32 / 16 bf16 / 32 i8

        if prefix % sublane == 0:
            tp = _largest_aligned_divisor(prefix, sublane, 8 * sublane)
        elif prefix <= 8 * sublane:
            tp = prefix                     # full (small) leading dim is allowed
        else:
            tp = 8 * sublane                # cdiv grid; partial tail row-block is masked

        col_budget = max(_LANE, block_budget // (tp * itemsize))
        tn = _largest_aligned_divisor(m, _LANE, col_budget)
        n_col = m // tn
        n_row = _cdiv(prefix, tp)

        # Guarantee >= 2 grid steps where possible (keeps both v7x cores busy).
        if n_row * n_col == 1:
            if tn % (2 * _LANE) == 0:
                tn //= 2
                n_col = m // tn
            elif tp % (2 * sublane) == 0:
                tp //= 2
                n_row = _cdiv(prefix, tp)

        out2 = pl.pallas_call(
            _maxpool_kernel,
            out_shape=jax.ShapeDtypeStruct((prefix, m), z.dtype),
            grid=(n_row, n_col),
            in_specs=[
                pl.BlockSpec((tp, tn), lambda i, j: (i, j)),                  # first half
                pl.BlockSpec((tp, tn), lambda i, j, _o=n_col: (i, j + _o)),   # second half
            ],
            out_specs=pl.BlockSpec((tp, tn), lambda i, j: (i, j)),
            compiler_params=cparams,
            cost_estimate=cost,
        )(z2, z2)
        return out2.reshape(out_nd_shape)

    if half % _SUBLANE_F32 == 0 and _SUBLANE_F32 * suffix * itemsize <= block_budget:
        # ---- Fallback (half-width not lane-aligned): keep the last axis at full
        # width and put the half-split on the sublane-aligned middle axis, so it
        # stays a pure DMA block offset — no in-kernel lane rotate, bounded VMEM.
        z3 = z.reshape(prefix, 2 * half, suffix)
        hb_cap = max(_SUBLANE_F32, block_budget // max(1, suffix * itemsize))
        hb = _largest_aligned_divisor(half, _SUBLANE_F32, hb_cap)
        tp = max(1, min(prefix, block_budget // (hb * suffix * itemsize)))
        n_h = half // hb
        n_row = _cdiv(prefix, tp)

        if n_row * n_h == 1:               # ensure >= 2 grid steps where possible
            if hb % (2 * _SUBLANE_F32) == 0:
                hb //= 2
                n_h = half // hb
            elif tp >= 2:
                tp = _cdiv(tp, 2)
                n_row = _cdiv(prefix, tp)

        out3 = pl.pallas_call(
            _maxpool_kernel,
            out_shape=jax.ShapeDtypeStruct((prefix, half, suffix), z.dtype),
            grid=(n_row, n_h),
            in_specs=[
                pl.BlockSpec((tp, hb, suffix), lambda i, j: (i, j, 0)),               # first half
                pl.BlockSpec((tp, hb, suffix), lambda i, j, _o=n_h: (i, j + _o, 0)),  # second half
            ],
            out_specs=pl.BlockSpec((tp, hb, suffix), lambda i, j: (i, j, 0)),
            compiler_params=cparams,
            cost_estimate=cost,
        )(z3, z3)
        return out3.reshape(out_nd_shape)

    # Doubly-unaligned shapes (half % 8 != 0 and half*suffix % 128 != 0): no
    # DMA-friendly split boundary exists; let XLA's fused slice+max handle it.
    # TODO(synk): a masked-store Pallas path for these ragged shapes.
    return _slice_max(z, axis, half)


if __name__ == "__main__":
    key = jax.random.PRNGKey(0)
    k0, k1, k2, k3 = jax.random.split(key, 4)

    # 1) Module-sized small input (NCHW, channels split in two): small-tensor bypass.
    z = jax.random.normal(k0, (2, 4, 16, 16), dtype=jnp.float32)
    out = jax.block_until_ready(max_pool(z, axis=1))
    ref = _slice_max(z, 1, 2)
    assert out.shape == ref.shape == (2, 2, 16, 16)
    assert jnp.array_equal(out, ref)

    # 2) f32 input large enough to exercise the lane-dense Pallas fast path.
    z1 = jax.random.normal(k1, (8, 64, 32, 32), dtype=jnp.float32)
    out1 = jax.block_until_ready(max_pool(z1, axis=1))
    assert out1.shape == (8, 32, 32, 32)
    assert jnp.array_equal(out1, _slice_max(z1, 1, 32))

    # 3) bf16 fast path (dtype-aware sublane tiling).
    z2 = jax.random.normal(k2, (16, 32, 32, 32), dtype=jnp.bfloat16)
    out2 = jax.block_until_ready(max_pool(z2, axis=1))
    assert out2.shape == (16, 16, 32, 32)
    assert jnp.array_equal(out2, _slice_max(z2, 1, 16))

    # 4) Non-lane-aligned half width -> 3-D sublane-split Pallas fallback path.
    z3 = jax.random.normal(k3, (64, 16, 30, 30), dtype=jnp.float32)
    out3 = jax.block_until_ready(max_pool(z3, axis=1))
    assert out3.shape == (64, 8, 30, 30)
    assert jnp.array_equal(out3, _slice_max(z3, 1, 8))

    print("KERNEL_OK")
</pallas_src>

<mosaic_0001>
module attributes {stable_mosaic.version = 11 : i64} {
  func.func @_maxpool_kernel(%arg0: i32, %arg1: i32, %arg2: memref<8x16384xf32, #tpu.memory_space<vmem>>, %arg3: memref<8x16384xf32, #tpu.memory_space<vmem>>, %arg4: memref<8x16384xf32, #tpu.memory_space<vmem>>) attributes {dimension_semantics = [#tpu.dimension_semantics<parallel>, #tpu.dimension_semantics<parallel>], iteration_bounds = array<i64: 1, 2>, scalar_prefetch = 0 : i64, scratch_operands = 0 : i64, tpu.core_type = #tpu.core_type<tc>, window_params = [{transform_indices = @transform_0, window_bounds = array<i64: 8, 16384>}, {transform_indices = @transform_1, window_bounds = array<i64: 8, 16384>}, {transform_indices = @transform_2, window_bounds = array<i64: 8, 16384>}]} {
    %c0 = arith.constant 0 : index
    %c0_0 = arith.constant 0 : index
    %0 = vector.load %arg2[%c0, %c0_0] : memref<8x16384xf32, #tpu.memory_space<vmem>>, vector<8x16384xf32>
    %c0_1 = arith.constant 0 : index
    %c0_2 = arith.constant 0 : index
    %1 = vector.load %arg3[%c0_1, %c0_2] : memref<8x16384xf32, #tpu.memory_space<vmem>>, vector<8x16384xf32>
    %2 = arith.maximumf %0, %1 : vector<8x16384xf32>
    %c0_3 = arith.constant 0 : index
    %c0_4 = arith.constant 0 : index
    %3 = vector.load %arg4[%c0_3, %c0_4] : memref<8x16384xf32, #tpu.memory_space<vmem>>, vector<8x16384xf32>
    tpu.vector_store %arg4[%c0_3, %c0_4], %2 {strides = array<i32>} : memref<8x16384xf32, #tpu.memory_space<vmem>>, vector<8x16384xf32>,
    return
  }
  func.func @transform_0(%arg0: i32, %arg1: i32) -> (i32, i32) {
    %c0_i32 = arith.constant 0 : i32
    return %arg0, %arg1 : i32, i32
  }
  func.func @transform_1(%arg0: i32, %arg1: i32) -> (i32, i32) {
    %c2_i32 = arith.constant 2 : i32
    %0 = arith.addi %arg1, %c2_i32 : i32
    %c0_i32 = arith.constant 0 : i32
    return %arg0, %0 : i32, i32
  }
  func.func @transform_2(%arg0: i32, %arg1: i32) -> (i32, i32) {
    %c0_i32 = arith.constant 0 : i32
    return %arg0, %arg1 : i32, i32
  }
}

</mosaic_0001>

<bundles_post_ra>
// kernel: tpu_custom_call.1
= control target key start
LH: loop header
LB: loop body
LE: loop exit
PB: predicated region body
PF: predicated region fallthrough
CT: control target
= control target key end

     0   :  { %7 = vsyncpa [#allocation3], 0  ;;  %s1794_s0 = inlined_call_operand.hbm [shape: f32[8,65536], index: 0, kind: input, shape index: {}]   ;;  %s1795_s1 = inlined_call_operand.hbm [shape: f32[8,65536], index: 1, kind: input, shape index: {}]   ;;  %s1796_s2 = inlined_call_operand.hbm [shape: f32[8,32768], index: 2, kind: output, shape index: {}]  }
   0x1   :  { %9 = vsyncpa [#allocation3 + $0x1], 0 }
   0x2   :  { %10 = vsyncpa [#allocation6], 0 }
   0x3   :  { %12 = vsyncpa [#allocation6 + $0x1], 0 }
   0x4   :  { %13 = vsyncpa [#allocation4], 0 }
   0x5   :  { %15 = vsyncpa [#allocation4 + $0x1], 0  ;;  %s1165_s9 = smov 0   ;;  %s1167_s10 = smov 0  }
   0x6   :  { %s1169_s11 = smov 0   ;;  %s1171_s12 = smov 0  }
   0x7   :  { %s1173_s13 = smov 0   ;;  %s1175_s14 = smov 0  }
   0x8   :  { %s1177_s15 = smov 0   ;;  %s1179_s16 = smov 0  }
   0x9   :  { %s1181_s17 = smov 0  }
   0xa LB: > { %s867_s18 = sadd.s32 4294967295, %s1145_s17   ;;  %s868_s19 = sadd.s32 4294967294, %s1145_s17   ;;  %s1145_s17 = sphi %s1181_s17, %s21_s17   ;;  %s1141_s16 = sphi %s1179_s16, %s1820_s16   ;;  %s1137_s15 = sphi %s1177_s15, %s1819_s15   ;;  %s1133_s14 = sphi %s1175_s14, %s1818_s14   ;;  %s1129_s13 = sphi %s1173_s13, %s1817_s13   ;;  %s1125_s12 = sphi %s1171_s12, %s1816_s12   ;;  %s1121_s11 = sphi %s1169_s11, %s1815_s11   ;;  %s1117_s10 = sphi %s1167_s10, %s1814_s10   ;;  %s1113_s9 = sphi %s1165_s9, %s1813_s9  }
   0xb   : > { %s30_s20 = sadd.s32 1, %s1141_s16  ;;  %s42_s21 = sadd.s32 1, %s1133_s14 }
   0xc   : > { %p31_p0 = scmp.ge.s32.totalorder %s30_s20, 2  ;;  %p49_p1 = scmp.ne.s32.totalorder %s1133_s14, %s1129_s13 }
   0xd   : > { %p1797_p2 = scmp.eq.s32.totalorder %s1145_s17, 0  ;;  %p55_p3 = scmp.ne.s32.totalorder %s1129_s13, %s1125_s12 }
   0xe   : > { %s1822_s20 = smov (%p31_p0, %s30_s20), 0  ;;  %p1230_p5 = scmp.eq.s32.totalorder %s867_s18, 0 }
   0xf   : > { %p1226_p4 = por %p1797_p2, %p49_p1  ;;  %s38_s24 = ssub.s32 %s1141_s16, %s1822_s20 }
  0x10   : > { %s65_s25 = sadd.s32 2, %s1141_s16  ;;  %p40_p6 = scmp.eq.s32.totalorder %s38_s24, 0 }
  0x11   : > { %p1242_p7 = por %p1230_p5, %p55_p3  ;;  %s66_s27 = sadd.s32 2, %s1822_s20 }
  0x12   : > { %p111_p8 = scmp.eq.s32.totalorder %s867_s18, 1  ;;  %s1250_s29 = ssub.s32 %s65_s25, %s66_s27 }
  0x13   : > { %s1248_s28 = scalar_select %p40_p6, %s1133_s14, %s42_s21  }
  0x14   : > { %p1255_p9 = por %p111_p8, %p49_p1  ;;  %p117_p11 = scmp.eq.s32.totalorder %s868_s19, 1 }
  0x15   : > { %p1798_p13 = scmp.lt.s32.totalorder %s1145_s17, 2  ;;  %s137_s4 = sand.u32 1, %s1133_s14  }
  0x16   : > { %p1265_p0 = por %p117_p11, %p55_p3  ;;  %s871_s5 = sshll.u32 %s137_s4, 10 }
  0x17   : > { %s886_s6 = sshll.u32 %s1141_s16, 14  ;;  %s141_s21 = scalar_lea.vmem [#allocation2], %s871_s5 }
  0x18   : > { %s1803_s3 = scalar_select %p1265_p0, 1, 0 }
  0x19   : > { %s149_s18 = scalar_lea.hbm %s1794_s0, %s886_s6  ;;  %s151_s24 = sshll.u32 %s141_s21, 4  ;;  %s152_s24 = int_to_ptr.vmem [resolvable:$true] %s151_s24 }
  0x1a   : > { %p1280_p1 = pnand %p1798_p13, %p1226_p4  ;;  %p877_p3 = scmp.ge.s32.totalorder %s1145_s17, 1 }
  0x1b   : > { %p178_p6 = scmp.lt.s32.totalorder %s1145_s17, 3  ;;  %s138_s25 = scalar_lea.sflag [#allocation3], %s137_s4 }
  0x1c   : > { %p982_p8 = pneg %p1280_p1  ;;  %s993_s27 = scalar_lea.vmem %s152_s24, 16384 }
  0x1d   : > { %p994_p11 = scmp.ne.s32.totalorder %s152_s24, %s993_s27  ;;  %s1147_s7 = smov [#allocation2]  }
  0x1e   : > { %s998_s5 = sshll.u32 %s1147_s7, 4  ;;  %s999_s5 = int_to_ptr.vmem [resolvable:$false] %s998_s5 }
  0x1f   : > { %p996_p12 = pnand %p994_p11, %p982_p8  ;;  %s1000_s8 = scalar_lea.vmem %s999_s5, 32768 }
  0x20   : > { %p1001_p10 = scmp.lt.s32.totalorder %s152_s24, %s999_s5  ;;  %p1002_p0 = scmp.lt.s32.totalorder %s1000_s8, %s993_s27 }
  0x21   : > { %p997_p2 = pneg %p996_p12 }
  0x22   : > { %p1003_p4 = por %p1002_p0, %p1001_p10 }
  0x24   : > { %p1004_p13 = pnand %p1003_p4, %p997_p2 }
  0x26   : > { %1007 = shalt.err (!%p1004_p13)
}
  0x27   : > { %898 = dma.hbm_to_vmem [thread:$0]  (!%p1280_p1), %s149_s18, 16384, %s152_s24, %s138_s25  }
  0x28   : > { %p1294_p2 = pnand %p877_p3, %p178_p6  ;;  %s72_s4 = sadd.s32 1, %s1121_s11 }
  0x29   : > { %p79_p10 = scmp.ne.s32.totalorder %s1121_s11, %s1117_s10  ;;  %p1806_p12 = scmp.eq.s32.totalorder %s1250_s29, 0 }
  0x2a   : > { %p1807_p13 = scmp.eq.s32.totalorder %s1145_s17, 0  ;;  %p85_p8 = scmp.ne.s32.totalorder %s1117_s10, %s1113_s9 }
  0x2b   : > { %s1304_s21 = scalar_select %p1806_p12, %s1121_s11, %s72_s4  }
  0x2c   : > { %p81_p0 = por %p79_p10, %p1807_p13  ;;  %s158_s19 = sand.u32 1, %s1121_s11  }
  0x2d   : > { %s798_s18 = scalar_lea.hbm %s1795_s1, %s886_s6  ;;  %p1318_p1 = por %p85_p8, %p1230_p5 }
  0x2e   : > { %s874_s25 = sshll.u32 %s158_s19, 10  ;;  %s799_s5 = scalar_lea.hbm %s798_s18, 32768 }
  0x2f   : > { %p1809_p3 = scmp.lt.s32.totalorder %s1145_s17, 2  ;;  %s162_s9 = scalar_lea.vmem [#allocation5], %s874_s25 }
  0x30   : > { %s173_s8 = sshll.u32 %s162_s9, 4  ;;  %s159_s4 = scalar_lea.sflag [#allocation6], %s158_s19  ;;  %s174_s8 = int_to_ptr.vmem [resolvable:$true] %s173_s8 }
  0x31   : > { %p1324_p6 = pnand %p1809_p3, %p81_p0  ;;  %s1021_s6 = scalar_lea.vmem %s174_s8, 16384 }
  0x32   : > { %p1022_p4 = scmp.ne.s32.totalorder %s174_s8, %s1021_s6  ;;  %s1148_s23 = smov [#allocation5]  }
  0x33   : > { %p1010_p11 = pneg %p1324_p6  ;;  %s1026_s27 = sshll.u32 %s1148_s23, 4  ;;  %s1027_s27 = int_to_ptr.vmem [resolvable:$false] %s1026_s27 }
  0x34   : > { %s1028_s7 = scalar_lea.vmem %s1027_s27, 32768  ;;  %p1029_p12 = scmp.lt.s32.totalorder %s174_s8, %s1027_s27 }
  0x35   : > { %p1024_p5 = pnand %p1022_p4, %p1010_p11  ;;  %p1030_p13 = scmp.lt.s32.totalorder %s1028_s7, %s1021_s6 }
  0x37   : > { %p1025_p10 = pneg %p1024_p5  ;;  %p1031_p0 = por %p1030_p13, %p1029_p12 }
  0x39   : > { %p1032_p8 = pnand %p1031_p0, %p1025_p10 }
  0x3b   : > { %1035 = shalt.err (!%p1032_p8)
}
  0x3c   : > { %901 = dma.hbm_to_vmem [thread:$0]  (!%p1324_p6), %s799_s5, 16384, %s174_s8, %s159_s4  }
  0x3d   : > { %182 = sbr.rel (%p1294_p2) target bundleno = 188 (0xbc), region = 28  ;;  %s1335_s19 = sand.u32 (!%p1294_p2), 1, %s1129_s13  }
  0x3e   : > { %s878_s18 = sshll.u32 (!%p1294_p2), %s1335_s19, 10  ;;  %s185_s25 = scalar_lea.sflag (!%p1294_p2), [#allocation3], %s1335_s19 }
  0x3f   : > { %s1339_s9 = scalar_lea.vmem (!%p1294_p2), [#allocation2], %s878_s18 }
  0x42   : > { %1100 = dma.done.wait (%p1242_p7), %s185_s25, 16384  }
  0x43   : > { %1102 = vsyncadd (%p1242_p7), %s185_s25, 4294950912  ;;  %s193_s5 = sand.u32 1, %s1117_s10  }
  0x44   : > { %s879_s22 = sshll.u32 %s193_s5, 10  ;;  %s194_s29 = scalar_lea.sflag [#allocation6], %s193_s5 }
  0x45   : > { %s1346_s8 = scalar_lea.vmem [#allocation5], %s879_s22 }
  0x46   : > { %1104 = dma.done.wait (%p1318_p1), %s194_s29, 16384  }
  0x47   : > { %1106 = vsyncadd (%p1318_p1), %s194_s29, 4294950912  ;;  %v227_v0 = vld [vmem:[%s1339_s9] sm:$0xff]  ;;  %v228_v2 = vld [vmem:[%s1339_s9 + $0x8] sm:$0xff]  ;;  %s1361_s26 = scalar_lea.vmem [#allocation7], %s878_s18  ;;  %s888_s24 = sshll.u32 %s1137_s15, 14 }
  0x48   : > { %v355_v1 = vld [vmem:[%s1346_s8] sm:$0xff]  ;;  %v356_v4 = vld [vmem:[%s1346_s8 + $0x8] sm:$0xff]  ;;  %v229_v5 = vld [vmem:[%s1339_s9 + $0x10] sm:$0xff]  ;;  %s756_s4 = sshll.u32 %s1361_s26, 4  ;;  %s1741_s23 = scalar_lea.hbm %s1796_s2, %s888_s24  ;;  %s757_s4 = int_to_ptr.vmem [resolvable:$true] %s756_s4 }
  0x49   : > { %v483_v3 = vmax.f32 %v227_v0, %v355_v1  ;;  %v357_v6 = vld [vmem:[%s1346_s8 + $0x10] sm:$0xff]  ;;  %v484_v7 = vmax.f32 %v228_v2, %v356_v4  ;;  %v230_v9 = vld [vmem:[%s1339_s9 + $0x18] sm:$0xff]  ;;  %v231_v11 = vld [vmem:[%s1339_s9 + $0x20] sm:$0xff]  ;;  %s740_s27 = scalar_lea.sflag [#allocation4], %s1335_s19  ;;  %s1037_s7 = scalar_lea.vmem %s757_s4, 16384 }
  0x4a   : > { %v485_v8 = vmax.f32 %v229_v5, %v357_v6  ;;  %v358_v10 = vld [vmem:[%s1346_s8 + $0x18] sm:$0xff]  ;;  %v359_v13 = vld [vmem:[%s1346_s8 + $0x20] sm:$0xff]  ;;  %v232_v14 = vld [vmem:[%s1339_s9 + $0x28] sm:$0xff]  ;;  %p1038_p7 = scmp.ne.s32.totalorder %s757_s4, %s1037_s7  ;;  %s1149_s18 = smov [#allocation7]  }
  0x4b   : > { %611 = vst [vmem:[%s1361_s26] sm:$0xff] %v483_v3  ;;  %v486_v12 = vmax.f32 %v230_v9, %v358_v10  ;;  %v360_v15 = vld [vmem:[%s1346_s8 + $0x28] sm:$0xff]  ;;  %612 = vst [vmem:[%s1361_s26 + $0x8] sm:$0xff] %v484_v7  ;;  %v487_v16 = vmax.f32 %v231_v11, %v359_v13  ;;  %v233_v18 = vld [vmem:[%s1339_s9 + $0x30] sm:$0xff]  ;;  %s1041_s25 = sshll.u32 %s1149_s18, 4  ;;  %s1042_s25 = int_to_ptr.vmem [resolvable:$false] %s1041_s25 }
  0x4c   : > { %613 = vst [vmem:[%s1361_s26 + $0x10] sm:$0xff] %v485_v8  ;;  %v488_v17 = vmax.f32 %v232_v14, %v360_v15  ;;  %v361_v19 = vld [vmem:[%s1346_s8 + $0x30] sm:$0xff]  ;;  %v234_v20 = vld [vmem:[%s1339_s9 + $0x38] sm:$0xff]  ;;  %v235_v23 = vld [vmem:[%s1339_s9 + $0x40] sm:$0xff]  ;;  %p1039_p2 = pnand %p1038_p7, %p1255_p9  ;;  %p1044_p3 = scmp.lt.s32.totalorder %s757_s4, %s1042_s25 }
  0x4d   : > { %614 = vst [vmem:[%s1361_s26 + $0x18] sm:$0xff] %v486_v12  ;;  %v489_v21 = vmax.f32 %v233_v18, %v361_v19  ;;  %v362_v22 = vld [vmem:[%s1346_s8 + $0x38] sm:$0xff]  ;;  %v363_v24 = vld [vmem:[%s1346_s8 + $0x40] sm:$0xff]  ;;  %615 = vst [vmem:[%s1361_s26 + $0x20] sm:$0xff] %v487_v16 }
  0x4e   : > { %616 = vst [vmem:[%s1361_s26 + $0x28] sm:$0xff] %v488_v17  ;;  %v490_v25 = vmax.f32 %v234_v20, %v362_v22  ;;  %v491_v26 = vmax.f32 %v235_v23, %v363_v24  ;;  %v236_v27 = vld [vmem:[%s1339_s9 + $0x48] sm:$0xff]  ;;  %v237_v29 = vld [vmem:[%s1339_s9 + $0x50] sm:$0xff]  ;;  %v238_v32 = vld [vmem:[%s1339_s9 + $0x58] sm:$0xff]  ;;  %p1040_p1 = pneg %p1039_p2 }
  0x4f   : > { %v364_v28 = vld [vmem:[%s1346_s8 + $0x48] sm:$0xff]  ;;  %617 = vst [vmem:[%s1361_s26 + $0x30] sm:$0xff] %v489_v21  ;;  %v365_v31 = vld [vmem:[%s1346_s8 + $0x50] sm:$0xff]  ;;  %v366_v33 = vld [vmem:[%s1346_s8 + $0x58] sm:$0xff] }
  0x50   : > { %v492_v30 = vmax.f32 %v236_v27, %v364_v28  ;;  %618 = vst [vmem:[%s1361_s26 + $0x38] sm:$0xff] %v490_v25  ;;  %619 = vst [vmem:[%s1361_s26 + $0x40] sm:$0xff] %v491_v26  ;;  %v493_v34 = vmax.f32 %v237_v29, %v365_v31  ;;  %v494_v35 = vmax.f32 %v238_v32, %v366_v33  ;;  %v239_v36 = vld [vmem:[%s1339_s9 + $0x60] sm:$0xff]  ;;  %v240_v38 = vld [vmem:[%s1339_s9 + $0x68] sm:$0xff] }
  0x51   : > { %v367_v37 = vld [vmem:[%s1346_s8 + $0x60] sm:$0xff]  ;;  %v368_v40 = vld [vmem:[%s1346_s8 + $0x68] sm:$0xff]  ;;  %v241_v41 = vld [vmem:[%s1339_s9 + $0x70] sm:$0xff] }
  0x52   : > { %620 = vst [vmem:[%s1361_s26 + $0x48] sm:$0xff] %v492_v30  ;;  %v495_v39 = vmax.f32 %v239_v36, %v367_v37  ;;  %v369_v42 = vld [vmem:[%s1346_s8 + $0x70] sm:$0xff]  ;;  %621 = vst [vmem:[%s1361_s26 + $0x50] sm:$0xff] %v493_v34  ;;  %v496_v43 = vmax.f32 %v240_v38, %v368_v40  ;;  %v242_v45 = vld [vmem:[%s1339_s9 + $0x78] sm:$0xff] }
  0x53   : > { %622 = vst [vmem:[%s1361_s26 + $0x58] sm:$0xff] %v494_v35  ;;  %v497_v44 = vmax.f32 %v241_v41, %v369_v42  ;;  %v370_v46 = vld [vmem:[%s1346_s8 + $0x78] sm:$0xff]  ;;  %v243_v47 = vld [vmem:[%s1339_s9 + $0x80] sm:$0xff]  ;;  %v244_v50 = vld [vmem:[%s1339_s9 + $0x88] sm:$0xff] }
  0x54   : > { %623 = vst [vmem:[%s1361_s26 + $0x60] sm:$0xff] %v495_v39  ;;  %v498_v48 = vmax.f32 %v242_v45, %v370_v46  ;;  %v371_v49 = vld [vmem:[%s1346_s8 + $0x80] sm:$0xff]  ;;  %v372_v51 = vld [vmem:[%s1346_s8 + $0x88] sm:$0xff]  ;;  %624 = vst [vmem:[%s1361_s26 + $0x68] sm:$0xff] %v496_v43 }
  0x55   : > { %625 = vst [vmem:[%s1361_s26 + $0x70] sm:$0xff] %v497_v44  ;;  %v499_v52 = vmax.f32 %v243_v47, %v371_v49  ;;  %v500_v53 = vmax.f32 %v244_v50, %v372_v51  ;;  %v245_v54 = vld [vmem:[%s1339_s9 + $0x90] sm:$0xff]  ;;  %v246_v56 = vld [vmem:[%s1339_s9 + $0x98] sm:$0xff]  ;;  %v247_v59 = vld [vmem:[%s1339_s9 + $0xa0] sm:$0xff] }
  0x56   : > { %v373_v55 = vld [vmem:[%s1346_s8 + $0x90] sm:$0xff]  ;;  %626 = vst [vmem:[%s1361_s26 + $0x78] sm:$0xff] %v498_v48  ;;  %v374_v58 = vld [vmem:[%s1346_s8 + $0x98] sm:$0xff]  ;;  %v375_v60 = vld [vmem:[%s1346_s8 + $0xa0] sm:$0xff] }
  0x57   : > { %v501_v57 = vmax.f32 %v245_v54, %v373_v55  ;;  %627 = vst [vmem:[%s1361_s26 + $0x80] sm:$0xff] %v499_v52  ;;  %628 = vst [vmem:[%s1361_s26 + $0x88] sm:$0xff] %v500_v53  ;;  %v502_v61 = vmax.f32 %v246_v56, %v374_v58  ;;  %v503_v62 = vmax.f32 %v247_v59, %v375_v60  ;;  %v248_v63 = vld [vmem:[%s1339_s9 + $0xa8] sm:$0xff]  ;;  %v249_v1 = vld [vmem:[%s1339_s9 + $0xb0] sm:$0xff] }
  0x58   : > { %v376_v0 = vld [vmem:[%s1346_s8 + $0xa8] sm:$0xff]  ;;  %v377_v3 = vld [vmem:[%s1346_s8 + $0xb0] sm:$0xff]  ;;  %v250_v4 = vld [vmem:[%s1339_s9 + $0xb8] sm:$0xff] }
  0x59   : > { %629 = vst [vmem:[%s1361_s26 + $0x90] sm:$0xff] %v501_v57  ;;  %v504_v2 = vmax.f32 %v248_v63, %v376_v0  ;;  %v378_v5 = vld [vmem:[%s1346_s8 + $0xb8] sm:$0xff]  ;;  %630 = vst [vmem:[%s1361_s26 + $0x98] sm:$0xff] %v502_v61  ;;  %v505_v6 = vmax.f32 %v249_v1, %v377_v3  ;;  %v251_v8 = vld [vmem:[%s1339_s9 + $0xc0] sm:$0xff] }
  0x5a   : > { %631 = vst [vmem:[%s1361_s26 + $0xa0] sm:$0xff] %v503_v62  ;;  %v506_v7 = vmax.f32 %v250_v4, %v378_v5  ;;  %v379_v9 = vld [vmem:[%s1346_s8 + $0xc0] sm:$0xff]  ;;  %v252_v10 = vld [vmem:[%s1339_s9 + $0xc8] sm:$0xff]  ;;  %v253_v13 = vld [vmem:[%s1339_s9 + $0xd0] sm:$0xff] }
  0x5b   : > { %632 = vst [vmem:[%s1361_s26 + $0xa8] sm:$0xff] %v504_v2  ;;  %v507_v11 = vmax.f32 %v251_v8, %v379_v9  ;;  %v380_v12 = vld [vmem:[%s1346_s8 + $0xc8] sm:$0xff]  ;;  %v381_v14 = vld [vmem:[%s1346_s8 + $0xd0] sm:$0xff]  ;;  %633 = vst [vmem:[%s1361_s26 + $0xb0] sm:$0xff] %v505_v6 }
  0x5c   : > { %634 = vst [vmem:[%s1361_s26 + $0xb8] sm:$0xff] %v506_v7  ;;  %v508_v15 = vmax.f32 %v252_v10, %v380_v12  ;;  %v509_v16 = vmax.f32 %v253_v13, %v381_v14  ;;  %v254_v17 = vld [vmem:[%s1339_s9 + $0xd8] sm:$0xff]  ;;  %v255_v19 = vld [vmem:[%s1339_s9 + $0xe0] sm:$0xff]  ;;  %v256_v22 = vld [vmem:[%s1339_s9 + $0xe8] sm:$0xff] }
  0x5d   : > { %v382_v18 = vld [vmem:[%s1346_s8 + $0xd8] sm:$0xff]  ;;  %635 = vst [vmem:[%s1361_s26 + $0xc0] sm:$0xff] %v507_v11  ;;  %v383_v21 = vld [vmem:[%s1346_s8 + $0xe0] sm:$0xff]  ;;  %v384_v23 = vld [vmem:[%s1346_s8 + $0xe8] sm:$0xff] }
  0x5e   : > { %v510_v20 = vmax.f32 %v254_v17, %v382_v18  ;;  %636 = vst [vmem:[%s1361_s26 + $0xc8] sm:$0xff] %v508_v15  ;;  %637 = vst [vmem:[%s1361_s26 + $0xd0] sm:$0xff] %v509_v16  ;;  %v511_v24 = vmax.f32 %v255_v19, %v383_v21  ;;  %v512_v25 = vmax.f32 %v256_v22, %v384_v23  ;;  %v257_v26 = vld [vmem:[%s1339_s9 + $0xf0] sm:$0xff]  ;;  %v258_v28 = vld [vmem:[%s1339_s9 + $0xf8] sm:$0xff] }
  0x5f   : > { %v385_v27 = vld [vmem:[%s1346_s8 + $0xf0] sm:$0xff]  ;;  %v386_v30 = vld [vmem:[%s1346_s8 + $0xf8] sm:$0xff]  ;;  %v259_v31 = vld [vmem:[%s1339_s9 + $0x100] sm:$0xff] }
  0x60   : > { %638 = vst [vmem:[%s1361_s26 + $0xd8] sm:$0xff] %v510_v20  ;;  %v513_v29 = vmax.f32 %v257_v26, %v385_v27  ;;  %v387_v32 = vld [vmem:[%s1346_s8 + $0x100] sm:$0xff]  ;;  %639 = vst [vmem:[%s1361_s26 + $0xe0] sm:$0xff] %v511_v24  ;;  %v514_v33 = vmax.f32 %v258_v28, %v386_v30  ;;  %v260_v35 = vld [vmem:[%s1339_s9 + $0x108] sm:$0xff] }
  0x61   : > { %640 = vst [vmem:[%s1361_s26 + $0xe8] sm:$0xff] %v512_v25  ;;  %v515_v34 = vmax.f32 %v259_v31, %v387_v32  ;;  %v388_v36 = vld [vmem:[%s1346_s8 + $0x108] sm:$0xff]  ;;  %v261_v37 = vld [vmem:[%s1339_s9 + $0x110] sm:$0xff]  ;;  %v262_v40 = vld [vmem:[%s1339_s9 + $0x118] sm:$0xff] }
  0x62   : > { %641 = vst [vmem:[%s1361_s26 + $0xf0] sm:$0xff] %v513_v29  ;;  %v516_v38 = vmax.f32 %v260_v35, %v388_v36  ;;  %v389_v39 = vld [vmem:[%s1346_s8 + $0x110] sm:$0xff]  ;;  %v390_v41 = vld [vmem:[%s1346_s8 + $0x118] sm:$0xff]  ;;  %642 = vst [vmem:[%s1361_s26 + $0xf8] sm:$0xff] %v514_v33 }
  0x63   : > { %643 = vst [vmem:[%s1361_s26 + $0x100] sm:$0xff] %v515_v34  ;;  %v517_v42 = vmax.f32 %v261_v37, %v389_v39  ;;  %v518_v43 = vmax.f32 %v262_v40, %v390_v41  ;;  %v263_v44 = vld [vmem:[%s1339_s9 + $0x120] sm:$0xff]  ;;  %v264_v46 = vld [vmem:[%s1339_s9 + $0x128] sm:$0xff]  ;;  %v265_v49 = vld [vmem:[%s1339_s9 + $0x130] sm:$0xff] }
  0x64   : > { %v391_v45 = vld [vmem:[%s1346_s8 + $0x120] sm:$0xff]  ;;  %644 = vst [vmem:[%s1361_s26 + $0x108] sm:$0xff] %v516_v38  ;;  %v392_v48 = vld [vmem:[%s1346_s8 + $0x128] sm:$0xff]  ;;  %v393_v50 = vld [vmem:[%s1346_s8 + $0x130] sm:$0xff] }
  0x65   : > { %v519_v47 = vmax.f32 %v263_v44, %v391_v45  ;;  %645 = vst [vmem:[%s1361_s26 + $0x110] sm:$0xff] %v517_v42  ;;  %646 = vst [vmem:[%s1361_s26 + $0x118] sm:$0xff] %v518_v43  ;;  %v520_v51 = vmax.f32 %v264_v46, %v392_v48  ;;  %v521_v52 = vmax.f32 %v265_v49, %v393_v50  ;;  %v266_v53 = vld [vmem:[%s1339_s9 + $0x138] sm:$0xff]  ;;  %v267_v55 = vld [vmem:[%s1339_s9 + $0x140] sm:$0xff] }
  0x66   : > { %v394_v54 = vld [vmem:[%s1346_s8 + $0x138] sm:$0xff]  ;;  %v395_v57 = vld [vmem:[%s1346_s8 + $0x140] sm:$0xff]  ;;  %v268_v58 = vld [vmem:[%s1339_s9 + $0x148] sm:$0xff] }
  0x67   : > { %647 = vst [vmem:[%s1361_s26 + $0x120] sm:$0xff] %v519_v47  ;;  %v522_v56 = vmax.f32 %v266_v53, %v394_v54  ;;  %v396_v59 = vld [vmem:[%s1346_s8 + $0x148] sm:$0xff]  ;;  %648 = vst [vmem:[%s1361_s26 + $0x128] sm:$0xff] %v520_v51  ;;  %v523_v60 = vmax.f32 %v267_v55, %v395_v57  ;;  %v269_v62 = vld [vmem:[%s1339_s9 + $0x150] sm:$0xff] }
  0x68   : > { %649 = vst [vmem:[%s1361_s26 + $0x130] sm:$0xff] %v521_v52  ;;  %v524_v61 = vmax.f32 %v268_v58, %v396_v59  ;;  %v397_v63 = vld [vmem:[%s1346_s8 + $0x150] sm:$0xff]  ;;  %v270_v0 = vld [vmem:[%s1339_s9 + $0x158] sm:$0xff]  ;;  %v271_v3 = vld [vmem:[%s1339_s9 + $0x160] sm:$0xff] }
  0x69   : > { %650 = vst [vmem:[%s1361_s26 + $0x138] sm:$0xff] %v522_v56  ;;  %v525_v1 = vmax.f32 %v269_v62, %v397_v63  ;;  %v398_v2 = vld [vmem:[%s1346_s8 + $0x158] sm:$0xff]  ;;  %v399_v4 = vld [vmem:[%s1346_s8 + $0x160] sm:$0xff]  ;;  %651 = vst [vmem:[%s1361_s26 + $0x140] sm:$0xff] %v523_v60 }
  0x6a   : > { %652 = vst [vmem:[%s1361_s26 + $0x148] sm:$0xff] %v524_v61  ;;  %v526_v5 = vmax.f32 %v270_v0, %v398_v2  ;;  %v527_v6 = vmax.f32 %v271_v3, %v399_v4  ;;  %v272_v7 = vld [vmem:[%s1339_s9 + $0x168] sm:$0xff]  ;;  %v273_v9 = vld [vmem:[%s1339_s9 + $0x170] sm:$0xff]  ;;  %v274_v12 = vld [vmem:[%s1339_s9 + $0x178] sm:$0xff] }
  0x6b   : > { %v400_v8 = vld [vmem:[%s1346_s8 + $0x168] sm:$0xff]  ;;  %653 = vst [vmem:[%s1361_s26 + $0x150] sm:$0xff] %v525_v1  ;;  %v401_v11 = vld [vmem:[%s1346_s8 + $0x170] sm:$0xff]  ;;  %v402_v13 = vld [vmem:[%s1346_s8 + $0x178] sm:$0xff] }
  0x6c   : > { %v528_v10 = vmax.f32 %v272_v7, %v400_v8  ;;  %654 = vst [vmem:[%s1361_s26 + $0x158] sm:$0xff] %v526_v5  ;;  %655 = vst [vmem:[%s1361_s26 + $0x160] sm:$0xff] %v527_v6  ;;  %v529_v14 = vmax.f32 %v273_v9, %v401_v11  ;;  %v530_v15 = vmax.f32 %v274_v12, %v402_v13  ;;  %v275_v16 = vld [vmem:[%s1339_s9 + $0x180] sm:$0xff]  ;;  %v276_v18 = vld [vmem:[%s1339_s9 + $0x188] sm:$0xff] }
  0x6d   : > { %v403_v17 = vld [vmem:[%s1346_s8 + $0x180] sm:$0xff]  ;;  %v404_v20 = vld [vmem:[%s1346_s8 + $0x188] sm:$0xff]  ;;  %v277_v21 = vld [vmem:[%s1339_s9 + $0x190] sm:$0xff] }
  0x6e   : > { %656 = vst [vmem:[%s1361_s26 + $0x168] sm:$0xff] %v528_v10  ;;  %v531_v19 = vmax.f32 %v275_v16, %v403_v17  ;;  %v405_v22 = vld [vmem:[%s1346_s8 + $0x190] sm:$0xff]  ;;  %657 = vst [vmem:[%s1361_s26 + $0x170] sm:$0xff] %v529_v14  ;;  %v532_v23 = vmax.f32 %v276_v18, %v404_v20  ;;  %v278_v25 = vld [vmem:[%s1339_s9 + $0x198] sm:$0xff] }
  0x6f   : > { %658 = vst [vmem:[%s1361_s26 + $0x178] sm:$0xff] %v530_v15  ;;  %v533_v24 = vmax.f32 %v277_v21, %v405_v22  ;;  %v406_v26 = vld [vmem:[%s1346_s8 + $0x198] sm:$0xff]  ;;  %v279_v27 = vld [vmem:[%s1339_s9 + $0x1a0] sm:$0xff]  ;;  %v280_v30 = vld [vmem:[%s1339_s9 + $0x1a8] sm:$0xff] }
  0x70   : > { %659 = vst [vmem:[%s1361_s26 + $0x180] sm:$0xff] %v531_v19  ;;  %v534_v28 = vmax.f32 %v278_v25, %v406_v26  ;;  %v407_v29 = vld [vmem:[%s1346_s8 + $0x1a0] sm:$0xff]  ;;  %v408_v31 = vld [vmem:[%s1346_s8 + $0x1a8] sm:$0xff]  ;;  %660 = vst [vmem:[%s1361_s26 + $0x188] sm:$0xff] %v532_v23 }
  0x71   : > { %661 = vst [vmem:[%s1361_s26 + $0x190] sm:$0xff] %v533_v24  ;;  %v535_v32 = vmax.f32 %v279_v27, %v407_v29  ;;  %v536_v33 = vmax.f32 %v280_v30, %v408_v31  ;;  %v281_v34 = vld [vmem:[%s1339_s9 + $0x1b0] sm:$0xff]  ;;  %v282_v36 = vld [vmem:[%s1339_s9 + $0x1b8] sm:$0xff]  ;;  %v283_v39 = vld [vmem:[%s1339_s9 + $0x1c0] sm:$0xff] }
  0x72   : > { %v409_v35 = vld [vmem:[%s1346_s8 + $0x1b0] sm:$0xff]  ;;  %662 = vst [vmem:[%s1361_s26 + $0x198] sm:$0xff] %v534_v28  ;;  %v410_v38 = vld [vmem:[%s1346_s8 + $0x1b8] sm:$0xff]  ;;  %v411_v40 = vld [vmem:[%s1346_s8 + $0x1c0] sm:$0xff] }
  0x73   : > { %v537_v37 = vmax.f32 %v281_v34, %v409_v35  ;;  %663 = vst [vmem:[%s1361_s26 + $0x1a0] sm:$0xff] %v535_v32  ;;  %664 = vst [vmem:[%s1361_s26 + $0x1a8] sm:$0xff] %v536_v33  ;;  %v538_v41 = vmax.f32 %v282_v36, %v410_v38  ;;  %v539_v42 = vmax.f32 %v283_v39, %v411_v40  ;;  %v284_v43 = vld [vmem:[%s1339_s9 + $0x1c8] sm:$0xff]  ;;  %v285_v45 = vld [vmem:[%s1339_s9 + $0x1d0] sm:$0xff] }
  0x74   : > { %v412_v44 = vld [vmem:[%s1346_s8 + $0x1c8] sm:$0xff]  ;;  %v413_v47 = vld [vmem:[%s1346_s8 + $0x1d0] sm:$0xff]  ;;  %v286_v48 = vld [vmem:[%s1339_s9 + $0x1d8] sm:$0xff] }
  0x75   : > { %665 = vst [vmem:[%s1361_s26 + $0x1b0] sm:$0xff] %v537_v37  ;;  %v540_v46 = vmax.f32 %v284_v43, %v412_v44  ;;  %v414_v49 = vld [vmem:[%s1346_s8 + $0x1d8] sm:$0xff]  ;;  %666 = vst [vmem:[%s1361_s26 + $0x1b8] sm:$0xff] %v538_v41  ;;  %v541_v50 = vmax.f32 %v285_v45, %v413_v47  ;;  %v287_v52 = vld [vmem:[%s1339_s9 + $0x1e0] sm:$0xff] }
  0x76   : > { %667 = vst [vmem:[%s1361_s26 + $0x1c0] sm:$0xff] %v539_v42  ;;  %v542_v51 = vmax.f32 %v286_v48, %v414_v49  ;;  %v415_v53 = vld [vmem:[%s1346_s8 + $0x1e0] sm:$0xff]  ;;  %v288_v54 = vld [vmem:[%s1339_s9 + $0x1e8] sm:$0xff]  ;;  %v289_v57 = vld [vmem:[%s1339_s9 + $0x1f0] sm:$0xff] }
  0x77   : > { %668 = vst [vmem:[%s1361_s26 + $0x1c8] sm:$0xff] %v540_v46  ;;  %v543_v55 = vmax.f32 %v287_v52, %v415_v53  ;;  %v416_v56 = vld [vmem:[%s1346_s8 + $0x1e8] sm:$0xff]  ;;  %v417_v58 = vld [vmem:[%s1346_s8 + $0x1f0] sm:$0xff]  ;;  %669 = vst [vmem:[%s1361_s26 + $0x1d0] sm:$0xff] %v541_v50 }
  0x78   : > { %670 = vst [vmem:[%s1361_s26 + $0x1d8] sm:$0xff] %v542_v51  ;;  %v544_v59 = vmax.f32 %v288_v54, %v416_v56  ;;  %v545_v60 = vmax.f32 %v289_v57, %v417_v58  ;;  %v290_v61 = vld [vmem:[%s1339_s9 + $0x1f8] sm:$0xff]  ;;  %v291_v63 = vld [vmem:[%s1339_s9 + $0x200] sm:$0xff]  ;;  %v292_v2 = vld [vmem:[%s1339_s9 + $0x208] sm:$0xff] }
  0x79   : > { %v418_v62 = vld [vmem:[%s1346_s8 + $0x1f8] sm:$0xff]  ;;  %671 = vst [vmem:[%s1361_s26 + $0x1e0] sm:$0xff] %v543_v55  ;;  %v419_v1 = vld [vmem:[%s1346_s8 + $0x200] sm:$0xff]  ;;  %v420_v3 = vld [vmem:[%s1346_s8 + $0x208] sm:$0xff] }
  0x7a   : > { %v546_v0 = vmax.f32 %v290_v61, %v418_v62  ;;  %672 = vst [vmem:[%s1361_s26 + $0x1e8] sm:$0xff] %v544_v59  ;;  %673 = vst [vmem:[%s1361_s26 + $0x1f0] sm:$0xff] %v545_v60  ;;  %v547_v4 = vmax.f32 %v291_v63, %v419_v1  ;;  %v548_v5 = vmax.f32 %v292_v2, %v420_v3  ;;  %v293_v6 = vld [vmem:[%s1339_s9 + $0x210] sm:$0xff]  ;;  %v294_v8 = vld [vmem:[%s1339_s9 + $0x218] sm:$0xff] }
  0x7b   : > { %v421_v7 = vld [vmem:[%s1346_s8 + $0x210] sm:$0xff]  ;;  %v422_v10 = vld [vmem:[%s1346_s8 + $0x218] sm:$0xff]  ;;  %v295_v11 = vld [vmem:[%s1339_s9 + $0x220] sm:$0xff] }
  0x7c   : > { %674 = vst [vmem:[%s1361_s26 + $0x1f8] sm:$0xff] %v546_v0  ;;  %v549_v9 = vmax.f32 %v293_v6, %v421_v7  ;;  %v423_v12 = vld [vmem:[%s1346_s8 + $0x220] sm:$0xff]  ;;  %675 = vst [vmem:[%s1361_s26 + $0x200] sm:$0xff] %v547_v4  ;;  %v550_v13 = vmax.f32 %v294_v8, %v422_v10  ;;  %v296_v15 = vld [vmem:[%s1339_s9 + $0x228] sm:$0xff] }
  0x7d   : > { %676 = vst [vmem:[%s1361_s26 + $0x208] sm:$0xff] %v548_v5  ;;  %v551_v14 = vmax.f32 %v295_v11, %v423_v12  ;;  %v424_v16 = vld [vmem:[%s1346_s8 + $0x228] sm:$0xff]  ;;  %v297_v17 = vld [vmem:[%s1339_s9 + $0x230] sm:$0xff]  ;;  %v298_v20 = vld [vmem:[%s1339_s9 + $0x238] sm:$0xff] }
  0x7e   : > { %677 = vst [vmem:[%s1361_s26 + $0x210] sm:$0xff] %v549_v9  ;;  %v552_v18 = vmax.f32 %v296_v15, %v424_v16  ;;  %v425_v19 = vld [vmem:[%s1346_s8 + $0x230] sm:$0xff]  ;;  %v426_v21 = vld [vmem:[%s1346_s8 + $0x238] sm:$0xff]  ;;  %678 = vst [vmem:[%s1361_s26 + $0x218] sm:$0xff] %v550_v13 }
  0x7f   : > { %679 = vst [vmem:[%s1361_s26 + $0x220] sm:$0xff] %v551_v14  ;;  %v553_v22 = vmax.f32 %v297_v17, %v425_v19  ;;  %v554_v23 = vmax.f32 %v298_v20, %v426_v21  ;;  %v299_v24 = vld [vmem:[%s1339_s9 + $0x240] sm:$0xff]  ;;  %v300_v26 = vld [vmem:[%s1339_s9 + $0x248] sm:$0xff]  ;;  %v301_v29 = vld [vmem:[%s1339_s9 + $0x250] sm:$0xff] }
  0x80   : > { %v427_v25 = vld [vmem:[%s1346_s8 + $0x240] sm:$0xff]  ;;  %680 = vst [vmem:[%s1361_s26 + $0x228] sm:$0xff] %v552_v18  ;;  %v428_v28 = vld [vmem:[%s1346_s8 + $0x248] sm:$0xff]  ;;  %v429_v30 = vld [vmem:[%s1346_s8 + $0x250] sm:$0xff] }
  0x81   : > { %v555_v27 = vmax.f32 %v299_v24, %v427_v25  ;;  %681 = vst [vmem:[%s1361_s26 + $0x230] sm:$0xff] %v553_v22  ;;  %682 = vst [vmem:[%s1361_s26 + $0x238] sm:$0xff] %v554_v23  ;;  %v556_v31 = vmax.f32 %v300_v26, %v428_v28  ;;  %v557_v32 = vmax.f32 %v301_v29, %v429_v30  ;;  %v302_v33 = vld [vmem:[%s1339_s9 + $0x258] sm:$0xff]  ;;  %v303_v35 = vld [vmem:[%s1339_s9 + $0x260] sm:$0xff] }
  0x82   : > { %v430_v34 = vld [vmem:[%s1346_s8 + $0x258] sm:$0xff]  ;;  %v431_v37 = vld [vmem:[%s1346_s8 + $0x260] sm:$0xff]  ;;  %v304_v38 = vld [vmem:[%s1339_s9 + $0x268] sm:$0xff] }
  0x83   : > { %683 = vst [vmem:[%s1361_s26 + $0x240] sm:$0xff] %v555_v27  ;;  %v558_v36 = vmax.f32 %v302_v33, %v430_v34  ;;  %v432_v39 = vld [vmem:[%s1346_s8 + $0x268] sm:$0xff]  ;;  %684 = vst [vmem:[%s1361_s26 + $0x248] sm:$0xff] %v556_v31  ;;  %v559_v40 = vmax.f32 %v303_v35, %v431_v37  ;;  %v305_v42 = vld [vmem:[%s1339_s9 + $0x270] sm:$0xff] }
  0x84   : > { %685 = vst [vmem:[%s1361_s26 + $0x250] sm:$0xff] %v557_v32  ;;  %v560_v41 = vmax.f32 %v304_v38, %v432_v39  ;;  %v433_v43 = vld [vmem:[%s1346_s8 + $0x270] sm:$0xff]  ;;  %v306_v44 = vld [vmem:[%s1339_s9 + $0x278] sm:$0xff]  ;;  %v307_v47 = vld [vmem:[%s1339_s9 + $0x280] sm:$0xff] }
  0x85   : > { %686 = vst [vmem:[%s1361_s26 + $0x258] sm:$0xff] %v558_v36  ;;  %v561_v45 = vmax.f32 %v305_v42, %v433_v43  ;;  %v434_v46 = vld [vmem:[%s1346_s8 + $0x278] sm:$0xff]  ;;  %v435_v48 = vld [vmem:[%s1346_s8 + $0x280] sm:$0xff]  ;;  %687 = vst [vmem:[%s1361_s26 + $0x260] sm:$0xff] %v559_v40 }
  0x86   : > { %688 = vst [vmem:[%s1361_s26 + $0x268] sm:$0xff] %v560_v41  ;;  %v562_v49 = vmax.f32 %v306_v44, %v434_v46  ;;  %v563_v50 = vmax.f32 %v307_v47, %v435_v48  ;;  %v308_v51 = vld [vmem:[%s1339_s9 + $0x288] sm:$0xff]  ;;  %v309_v53 = vld [vmem:[%s1339_s9 + $0x290] sm:$0xff]  ;;  %v310_v56 = vld [vmem:[%s1339_s9 + $0x298] sm:$0xff] }
  0x87   : > { %v436_v52 = vld [vmem:[%s1346_s8 + $0x288] sm:$0xff]  ;;  %689 = vst [vmem:[%s1361_s26 + $0x270] sm:$0xff] %v561_v45  ;;  %v437_v55 = vld [vmem:[%s1346_s8 + $0x290] sm:$0xff]  ;;  %v438_v57 = vld [vmem:[%s1346_s8 + $0x298] sm:$0xff] }
  0x88   : > { %v564_v54 = vmax.f32 %v308_v51, %v436_v52  ;;  %690 = vst [vmem:[%s1361_s26 + $0x278] sm:$0xff] %v562_v49  ;;  %691 = vst [vmem:[%s1361_s26 + $0x280] sm:$0xff] %v563_v50  ;;  %v565_v58 = vmax.f32 %v309_v53, %v437_v55  ;;  %v566_v59 = vmax.f32 %v310_v56, %v438_v57  ;;  %v311_v60 = vld [vmem:[%s1339_s9 + $0x2a0] sm:$0xff]  ;;  %v312_v62 = vld [vmem:[%s1339_s9 + $0x2a8] sm:$0xff] }
  0x89   : > { %v439_v61 = vld [vmem:[%s1346_s8 + $0x2a0] sm:$0xff]  ;;  %v440_v0 = vld [vmem:[%s1346_s8 + $0x2a8] sm:$0xff]  ;;  %v313_v1 = vld [vmem:[%s1339_s9 + $0x2b0] sm:$0xff] }
  0x8a   : > { %692 = vst [vmem:[%s1361_s26 + $0x288] sm:$0xff] %v564_v54  ;;  %v567_v63 = vmax.f32 %v311_v60, %v439_v61  ;;  %v441_v2 = vld [vmem:[%s1346_s8 + $0x2b0] sm:$0xff]  ;;  %693 = vst [vmem:[%s1361_s26 + $0x290] sm:$0xff] %v565_v58  ;;  %v568_v3 = vmax.f32 %v312_v62, %v440_v0  ;;  %v314_v5 = vld [vmem:[%s1339_s9 + $0x2b8] sm:$0xff] }
  0x8b   : > { %694 = vst [vmem:[%s1361_s26 + $0x298] sm:$0xff] %v566_v59  ;;  %v569_v4 = vmax.f32 %v313_v1, %v441_v2  ;;  %v442_v6 = vld [vmem:[%s1346_s8 + $0x2b8] sm:$0xff]  ;;  %v315_v7 = vld [vmem:[%s1339_s9 + $0x2c0] sm:$0xff]  ;;  %v316_v10 = vld [vmem:[%s1339_s9 + $0x2c8] sm:$0xff] }
  0x8c   : > { %695 = vst [vmem:[%s1361_s26 + $0x2a0] sm:$0xff] %v567_v63  ;;  %v570_v8 = vmax.f32 %v314_v5, %v442_v6  ;;  %v443_v9 = vld [vmem:[%s1346_s8 + $0x2c0] sm:$0xff]  ;;  %v444_v11 = vld [vmem:[%s1346_s8 + $0x2c8] sm:$0xff]  ;;  %696 = vst [vmem:[%s1361_s26 + $0x2a8] sm:$0xff] %v568_v3 }
  0x8d   : > { %697 = vst [vmem:[%s1361_s26 + $0x2b0] sm:$0xff] %v569_v4  ;;  %v571_v12 = vmax.f32 %v315_v7, %v443_v9  ;;  %v572_v13 = vmax.f32 %v316_v10, %v444_v11  ;;  %v317_v14 = vld [vmem:[%s1339_s9 + $0x2d0] sm:$0xff]  ;;  %v318_v16 = vld [vmem:[%s1339_s9 + $0x2d8] sm:$0xff]  ;;  %v319_v19 = vld [vmem:[%s1339_s9 + $0x2e0] sm:$0xff] }
  0x8e   : > { %v445_v15 = vld [vmem:[%s1346_s8 + $0x2d0] sm:$0xff]  ;;  %698 = vst [vmem:[%s1361_s26 + $0x2b8] sm:$0xff] %v570_v8  ;;  %v446_v18 = vld [vmem:[%s1346_s8 + $0x2d8] sm:$0xff]  ;;  %v447_v20 = vld [vmem:[%s1346_s8 + $0x2e0] sm:$0xff] }
  0x8f   : > { %v573_v17 = vmax.f32 %v317_v14, %v445_v15  ;;  %699 = vst [vmem:[%s1361_s26 + $0x2c0] sm:$0xff] %v571_v12  ;;  %700 = vst [vmem:[%s1361_s26 + $0x2c8] sm:$0xff] %v572_v13  ;;  %v574_v21 = vmax.f32 %v318_v16, %v446_v18  ;;  %v575_v22 = vmax.f32 %v319_v19, %v447_v20  ;;  %v320_v23 = vld [vmem:[%s1339_s9 + $0x2e8] sm:$0xff]  ;;  %v321_v25 = vld [vmem:[%s1339_s9 + $0x2f0] sm:$0xff] }
  0x90   : > { %v448_v24 = vld [vmem:[%s1346_s8 + $0x2e8] sm:$0xff]  ;;  %v449_v27 = vld [vmem:[%s1346_s8 + $0x2f0] sm:$0xff]  ;;  %v322_v28 = vld [vmem:[%s1339_s9 + $0x2f8] sm:$0xff] }
  0x91   : > { %701 = vst [vmem:[%s1361_s26 + $0x2d0] sm:$0xff] %v573_v17  ;;  %v576_v26 = vmax.f32 %v320_v23, %v448_v24  ;;  %v450_v29 = vld [vmem:[%s1346_s8 + $0x2f8] sm:$0xff]  ;;  %702 = vst [vmem:[%s1361_s26 + $0x2d8] sm:$0xff] %v574_v21  ;;  %v577_v30 = vmax.f32 %v321_v25, %v449_v27  ;;  %v323_v32 = vld [vmem:[%s1339_s9 + $0x300] sm:$0xff] }
  0x92   : > { %703 = vst [vmem:[%s1361_s26 + $0x2e0] sm:$0xff] %v575_v22  ;;  %v578_v31 = vmax.f32 %v322_v28, %v450_v29  ;;  %v451_v33 = vld [vmem:[%s1346_s8 + $0x300] sm:$0xff]  ;;  %v324_v34 = vld [vmem:[%s1339_s9 + $0x308] sm:$0xff]  ;;  %v325_v37 = vld [vmem:[%s1339_s9 + $0x310] sm:$0xff] }
  0x93   : > { %704 = vst [vmem:[%s1361_s26 + $0x2e8] sm:$0xff] %v576_v26  ;;  %v579_v35 = vmax.f32 %v323_v32, %v451_v33  ;;  %v452_v36 = vld [vmem:[%s1346_s8 + $0x308] sm:$0xff]  ;;  %v453_v38 = vld [vmem:[%s1346_s8 + $0x310] sm:$0xff]  ;;  %705 = vst [vmem:[%s1361_s26 + $0x2f0] sm:$0xff] %v577_v30 }
  0x94   : > { %706 = vst [vmem:[%s1361_s26 + $0x2f8] sm:$0xff] %v578_v31  ;;  %v580_v39 = vmax.f32 %v324_v34, %v452_v36  ;;  %v581_v40 = vmax.f32 %v325_v37, %v453_v38  ;;  %v326_v41 = vld [vmem:[%s1339_s9 + $0x318] sm:$0xff]  ;;  %v327_v43 = vld [vmem:[%s1339_s9 + $0x320] sm:$0xff]  ;;  %v328_v46 = vld [vmem:[%s1339_s9 + $0x328] sm:$0xff] }
  0x95   : > { %v454_v42 = vld [vmem:[%s1346_s8 + $0x318] sm:$0xff]  ;;  %707 = vst [vmem:[%s1361_s26 + $0x300] sm:$0xff] %v579_v35  ;;  %v455_v45 = vld [vmem:[%s1346_s8 + $0x320] sm:$0xff]  ;;  %v456_v47 = vld [vmem:[%s1346_s8 + $0x328] sm:$0xff] }
  0x96   : > { %v582_v44 = vmax.f32 %v326_v41, %v454_v42  ;;  %708 = vst [vmem:[%s1361_s26 + $0x308] sm:$0xff] %v580_v39  ;;  %709 = vst [vmem:[%s1361_s26 + $0x310] sm:$0xff] %v581_v40  ;;  %v583_v48 = vmax.f32 %v327_v43, %v455_v45  ;;  %v584_v49 = vmax.f32 %v328_v46, %v456_v47  ;;  %v329_v50 = vld [vmem:[%s1339_s9 + $0x330] sm:$0xff]  ;;  %v330_v52 = vld [vmem:[%s1339_s9 + $0x338] sm:$0xff] }
  0x97   : > { %v457_v51 = vld [vmem:[%s1346_s8 + $0x330] sm:$0xff]  ;;  %v458_v54 = vld [vmem:[%s1346_s8 + $0x338] sm:$0xff]  ;;  %v331_v55 = vld [vmem:[%s1339_s9 + $0x340] sm:$0xff] }
  0x98   : > { %710 = vst [vmem:[%s1361_s26 + $0x318] sm:$0xff] %v582_v44  ;;  %v585_v53 = vmax.f32 %v329_v50, %v457_v51  ;;  %v459_v56 = vld [vmem:[%s1346_s8 + $0x340] sm:$0xff]  ;;  %711 = vst [vmem:[%s1361_s26 + $0x320] sm:$0xff] %v583_v48  ;;  %v586_v57 = vmax.f32 %v330_v52, %v458_v54  ;;  %v332_v59 = vld [vmem:[%s1339_s9 + $0x348] sm:$0xff] }
  0x99   : > { %712 = vst [vmem:[%s1361_s26 + $0x328] sm:$0xff] %v584_v49  ;;  %v587_v58 = vmax.f32 %v331_v55, %v459_v56  ;;  %v460_v60 = vld [vmem:[%s1346_s8 + $0x348] sm:$0xff]  ;;  %v333_v61 = vld [vmem:[%s1339_s9 + $0x350] sm:$0xff]  ;;  %v334_v0 = vld [vmem:[%s1339_s9 + $0x358] sm:$0xff] }
  0x9a   : > { %713 = vst [vmem:[%s1361_s26 + $0x330] sm:$0xff] %v585_v53  ;;  %v588_v62 = vmax.f32 %v332_v59, %v460_v60  ;;  %v461_v63 = vld [vmem:[%s1346_s8 + $0x350] sm:$0xff]  ;;  %v462_v1 = vld [vmem:[%s1346_s8 + $0x358] sm:$0xff]  ;;  %714 = vst [vmem:[%s1361_s26 + $0x338] sm:$0xff] %v586_v57 }
  0x9b   : > { %715 = vst [vmem:[%s1361_s26 + $0x340] sm:$0xff] %v587_v58  ;;  %v589_v2 = vmax.f32 %v333_v61, %v461_v63  ;;  %v590_v3 = vmax.f32 %v334_v0, %v462_v1  ;;  %v335_v4 = vld [vmem:[%s1339_s9 + $0x360] sm:$0xff]  ;;  %v336_v6 = vld [vmem:[%s1339_s9 + $0x368] sm:$0xff]  ;;  %v337_v9 = vld [vmem:[%s1339_s9 + $0x370] sm:$0xff] }
  0x9c   : > { %v463_v5 = vld [vmem:[%s1346_s8 + $0x360] sm:$0xff]  ;;  %716 = vst [vmem:[%s1361_s26 + $0x348] sm:$0xff] %v588_v62  ;;  %v464_v8 = vld [vmem:[%s1346_s8 + $0x368] sm:$0xff]  ;;  %v465_v10 = vld [vmem:[%s1346_s8 + $0x370] sm:$0xff] }
  0x9d   : > { %v591_v7 = vmax.f32 %v335_v4, %v463_v5  ;;  %717 = vst [vmem:[%s1361_s26 + $0x350] sm:$0xff] %v589_v2  ;;  %718 = vst [vmem:[%s1361_s26 + $0x358] sm:$0xff] %v590_v3  ;;  %v592_v11 = vmax.f32 %v336_v6, %v464_v8  ;;  %v593_v12 = vmax.f32 %v337_v9, %v465_v10  ;;  %v338_v13 = vld [vmem:[%s1339_s9 + $0x378] sm:$0xff]  ;;  %v339_v15 = vld [vmem:[%s1339_s9 + $0x380] sm:$0xff] }
  0x9e   : > { %v466_v14 = vld [vmem:[%s1346_s8 + $0x378] sm:$0xff]  ;;  %v467_v17 = vld [vmem:[%s1346_s8 + $0x380] sm:$0xff]  ;;  %v340_v18 = vld [vmem:[%s1339_s9 + $0x388] sm:$0xff] }
  0x9f   : > { %719 = vst [vmem:[%s1361_s26 + $0x360] sm:$0xff] %v591_v7  ;;  %v594_v16 = vmax.f32 %v338_v13, %v466_v14  ;;  %v468_v19 = vld [vmem:[%s1346_s8 + $0x388] sm:$0xff]  ;;  %720 = vst [vmem:[%s1361_s26 + $0x368] sm:$0xff] %v592_v11  ;;  %v595_v20 = vmax.f32 %v339_v15, %v467_v17  ;;  %v341_v22 = vld [vmem:[%s1339_s9 + $0x390] sm:$0xff] }
  0xa0   : > { %721 = vst [vmem:[%s1361_s26 + $0x370] sm:$0xff] %v593_v12  ;;  %v596_v21 = vmax.f32 %v340_v18, %v468_v19  ;;  %v469_v23 = vld [vmem:[%s1346_s8 + $0x390] sm:$0xff]  ;;  %v342_v24 = vld [vmem:[%s1339_s9 + $0x398] sm:$0xff]  ;;  %v343_v27 = vld [vmem:[%s1339_s9 + $0x3a0] sm:$0xff] }
  0xa1   : > { %722 = vst [vmem:[%s1361_s26 + $0x378] sm:$0xff] %v594_v16  ;;  %v597_v25 = vmax.f32 %v341_v22, %v469_v23  ;;  %v470_v26 = vld [vmem:[%s1346_s8 + $0x398] sm:$0xff]  ;;  %v471_v28 = vld [vmem:[%s1346_s8 + $0x3a0] sm:$0xff]  ;;  %723 = vst [vmem:[%s1361_s26 + $0x380] sm:$0xff] %v595_v20 }
  0xa2   : > { %724 = vst [vmem:[%s1361_s26 + $0x388] sm:$0xff] %v596_v21  ;;  %v598_v29 = vmax.f32 %v342_v24, %v470_v26  ;;  %v599_v30 = vmax.f32 %v343_v27, %v471_v28  ;;  %v344_v31 = vld [vmem:[%s1339_s9 + $0x3a8] sm:$0xff]  ;;  %v345_v33 = vld [vmem:[%s1339_s9 + $0x3b0] sm:$0xff]  ;;  %v346_v36 = vld [vmem:[%s1339_s9 + $0x3b8] sm:$0xff] }
  0xa3   : > { %v472_v32 = vld [vmem:[%s1346_s8 + $0x3a8] sm:$0xff]  ;;  %725 = vst [vmem:[%s1361_s26 + $0x390] sm:$0xff] %v597_v25  ;;  %v473_v35 = vld [vmem:[%s1346_s8 + $0x3b0] sm:$0xff]  ;;  %v474_v37 = vld [vmem:[%s1346_s8 + $0x3b8] sm:$0xff] }
  0xa4   : > { %v600_v34 = vmax.f32 %v344_v31, %v472_v32  ;;  %726 = vst [vmem:[%s1361_s26 + $0x398] sm:$0xff] %v598_v29  ;;  %727 = vst [vmem:[%s1361_s26 + $0x3a0] sm:$0xff] %v599_v30  ;;  %v601_v38 = vmax.f32 %v345_v33, %v473_v35  ;;  %v602_v39 = vmax.f32 %v346_v36, %v474_v37  ;;  %v347_v40 = vld [vmem:[%s1339_s9 + $0x3c0] sm:$0xff]  ;;  %v348_v42 = vld [vmem:[%s1339_s9 + $0x3c8] sm:$0xff] }
  0xa5   : > { %v475_v41 = vld [vmem:[%s1346_s8 + $0x3c0] sm:$0xff]  ;;  %v476_v44 = vld [vmem:[%s1346_s8 + $0x3c8] sm:$0xff]  ;;  %v349_v45 = vld [vmem:[%s1339_s9 + $0x3d0] sm:$0xff] }
  0xa6   : > { %728 = vst [vmem:[%s1361_s26 + $0x3a8] sm:$0xff] %v600_v34  ;;  %v603_v43 = vmax.f32 %v347_v40, %v475_v41  ;;  %v477_v46 = vld [vmem:[%s1346_s8 + $0x3d0] sm:$0xff]  ;;  %729 = vst [vmem:[%s1361_s26 + $0x3b0] sm:$0xff] %v601_v38  ;;  %v604_v47 = vmax.f32 %v348_v42, %v476_v44  ;;  %v350_v49 = vld [vmem:[%s1339_s9 + $0x3d8] sm:$0xff] }
  0xa7   : > { %730 = vst [vmem:[%s1361_s26 + $0x3b8] sm:$0xff] %v602_v39  ;;  %v605_v48 = vmax.f32 %v349_v45, %v477_v46  ;;  %v478_v50 = vld [vmem:[%s1346_s8 + $0x3d8] sm:$0xff]  ;;  %v351_v51 = vld [vmem:[%s1339_s9 + $0x3e0] sm:$0xff]  ;;  %v352_v54 = vld [vmem:[%s1339_s9 + $0x3e8] sm:$0xff] }
  0xa8   : > { %731 = vst [vmem:[%s1361_s26 + $0x3c0] sm:$0xff] %v603_v43  ;;  %v606_v52 = vmax.f32 %v350_v49, %v478_v50  ;;  %v479_v53 = vld [vmem:[%s1346_s8 + $0x3e0] sm:$0xff]  ;;  %v480_v55 = vld [vmem:[%s1346_s8 + $0x3e8] sm:$0xff]  ;;  %732 = vst [vmem:[%s1361_s26 + $0x3c8] sm:$0xff] %v604_v47 }
  0xa9   : > { %733 = vst [vmem:[%s1361_s26 + $0x3d0] sm:$0xff] %v605_v48  ;;  %v607_v56 = vmax.f32 %v351_v51, %v479_v53  ;;  %v608_v57 = vmax.f32 %v352_v54, %v480_v55  ;;  %v353_v58 = vld [vmem:[%s1339_s9 + $0x3f0] sm:$0xff]  ;;  %v354_v60 = vld [vmem:[%s1339_s9 + $0x3f8] sm:$0xff]  ;;  %s1043_s9 = scalar_lea.vmem %s1042_s25, 32768 }
  0xaa   : > { %v481_v59 = vld [vmem:[%s1346_s8 + $0x3f0] sm:$0xff]  ;;  %734 = vst [vmem:[%s1361_s26 + $0x3d8] sm:$0xff] %v606_v52  ;;  %v482_v62 = vld [vmem:[%s1346_s8 + $0x3f8] sm:$0xff]  ;;  %p1045_p6 = scmp.lt.s32.totalorder %s1043_s9, %s1037_s7 }
  0xab   : > { %v609_v61 = vmax.f32 %v353_v58, %v481_v59  ;;  %735 = vst [vmem:[%s1361_s26 + $0x3e0] sm:$0xff] %v607_v56  ;;  %736 = vst [vmem:[%s1361_s26 + $0x3e8] sm:$0xff] %v608_v57  ;;  %v610_v63 = vmax.f32 %v354_v60, %v482_v62 }
  0xac   : > { %p1046_p11 = por %p1045_p6, %p1044_p3 }
  0xad   : > { %737 = vst [vmem:[%s1361_s26 + $0x3f0] sm:$0xff] %v609_v61  ;;  %738 = vst [vmem:[%s1361_s26 + $0x3f8] sm:$0xff] %v610_v63 }
  0xae   : > { %p1047_p4 = pnand %p1046_p11, %p1040_p1 }
  0xb0   : > { %1050 = shalt.err (!%p1047_p4)
}
  0xb1   : > { %s1051_s5 = scalar_lea.hbm %s1741_s23, 16384  ;;  %s1055_s29 = scalar_lea.hbm %s1796_s2, 32768 }
  0xb2   : > { %p1052_p5 = scmp.ne.s32.totalorder %s1741_s23, %s1051_s5  ;;  %p1056_p13 = scmp.lt.s32.totalorder %s1741_s23, %s1796_s2 }
  0xb3   : > { %p1057_p0 = scmp.lt.s32.totalorder %s1055_s29, %s1051_s5 }
  0xb4   : > { %p1053_p10 = pnand %p1052_p5, %p1255_p9 }
  0xb5   : > { %p1058_p8 = por %p1057_p0, %p1056_p13 }
  0xb6   : > { %p1054_p12 = pneg %p1053_p10 }
  0xb8   : > { %p1059_p7 = pnand %p1058_p8, %p1054_p12 }
  0xba   : > { %1062 = shalt.err (!%p1059_p7)
}
  0xbb   : > { %893 = dma.vmem_to_hbm [thread:$0]  (%p1255_p9), %s757_s4, 16384, %s1741_s23, %s740_s27  }
  0xbc PF: > { %s768_s24 = sand.u32 1, %s1125_s12   ;;  %p1811_p2 = scmp.ne.s32.totalorder %s1803_s3, 0 }
  0xbd   : > { %p1812_p1 = scmp.ge.s32.totalorder %s1145_s17, 2  ;;  %s769_s6 = scalar_lea.sflag [#allocation4], %s768_s24 }
  0xbf   : > { %p903_p3 = pnand %p1812_p1, %p1811_p2 }
  0xc1   : > { %p904_p6 = pneg %p903_p3 }
  0xc3   : > { %1108 = dma.done.wait (%p904_p6), %s769_s6, 16384  }
  0xc4   : > { %1110 = vsyncadd (%p904_p6), %s769_s6, 4294950912  ;;  %s21_s17 = sadd.s32 1, %s1145_s17   ;;  %s1813_s9 = smov %s1117_s10 }
  0xc5   : > { %p18_p11 = scmp.ge.s32.totalorder %s21_s17, 4   ;;  %s1814_s10 = smov %s1121_s11 }
  0xc6   : > { %s1815_s11 = smov %s1304_s21  ;;  %s1816_s12 = smov %s1129_s13 }
  0xc7   : > { %s1817_s13 = smov %s1133_s14  ;;  %s1818_s14 = smov %s1248_s28 }
  0xc8   : > { %s1819_s15 = smov %s1141_s16  ;;  %s1820_s16 = smov %s1822_s20 }
  0xc9   :  { %20 = sbr.rel (!%p18_p11) target bundleno = 10 (0xa), region = 86 }
  0xce   :  { %774 = vsyncpa [#allocation3], 1 }
  0xcf   :  { %776 = vsyncpa [#allocation3 + $0x1], 1 }
  0xd0   :  { %777 = vsyncpa [#allocation6], 1 }
  0xd1   :  { %779 = vsyncpa [#allocation6 + $0x1], 1 }
  0xd2   :  { %780 = vsyncpa [#allocation4], 1 }
  0xd3   :  { %782 = vsyncpa [#allocation4 + $0x1], 1 }

</bundles_post_ra>
